<compile_context>
chip_gen: v7x
topology: tpu7x:2x2x1
jax: 0.10.0
libtpu: 0.0.40
codegen_flags: <defaults>
</compile_context>

<pallas_src>
import jax
import jax.numpy as jnp
import numpy as np
from jax.experimental import pallas as pl
from jax.experimental.pallas import tpu as pltpu


# --------------------------------- the kernel --------------------------------

def _make_decoder_kernel(n_window):
    """One (Tp, Tn) output tile; full K = W*E contracted per tile (no grid reduction)."""
    def kernel(x_ref, w_ref, b_ref, o_ref):
        # x_ref: (1, W, Tp, E)   w_ref: (W, E, Tn)   b_ref: (1, Tn)   o_ref: (1, Tp, Tn)
        acc = jnp.dot(x_ref[0, 0], w_ref[0], preferred_element_type=jnp.float32)
        for w in range(1, n_window):          # W is small & static -> unrolled
            acc = acc + jnp.dot(x_ref[0, w], w_ref[w],
                                preferred_element_type=jnp.float32)
        o_ref[0] = (acc + b_ref[...]).astype(o_ref.dtype)
    return kernel


def _pick_tn(N, K, itemsize, budget_bytes=8 * 1024 * 1024):
    """Full N if the (K, N) weight fits a modest VMEM budget, else a 128-multiple divisor."""
    if K * N * itemsize <= budget_bytes or N % 128 != 0:
        return N
    t = (budget_bytes // (K * itemsize) // 128) * 128
    while t >= 128:
        if N % t == 0:
            return t
        t -= 128
    return N


# --------------------------------- wrapper ------------------------------------

def decoder_forward(x, weight, bias, *, img_size, patch_size, window_size, in_chans,
                    embed_dim):
    hp = img_size // patch_size
    P = hp * hp                         # n_patches
    W, E, C, ps = window_size, embed_dim, in_chans, patch_size
    B = x.size // (W * P * E)
    x = x.reshape(B, W, P, E)           # natural layout; no wrapper transpose

    K = W * E
    N = C * ps * ps

    # ---- tiny layout-only prep of weight / bias (a few KiB..MiB) ----
    w2 = weight.reshape(W, E, N).astype(x.dtype)       # col n = c*ps*ps + u*ps + v
    b2 = jnp.repeat(bias, ps * ps).astype(jnp.float32).reshape(1, N)

    Tp = P                              # per-batch patch count is small (hp^2 <= 64)
    Tn = _pick_tn(N, K, w2.dtype.itemsize)
    grid = (B, P // Tp, N // Tn)        # all axes independent -> fully parallel

    out_dtype = x.dtype
    cost = pl.CostEstimate(
        flops=2 * B * P * K * N,
        transcendentals=0,
        bytes_accessed=(x.size * x.dtype.itemsize
                        + w2.size * w2.dtype.itemsize
                        + b2.size * b2.dtype.itemsize
                        + B * P * N * jnp.dtype(out_dtype).itemsize),
    )

    out_flat = pl.pallas_call(
        _make_decoder_kernel(W),
        grid_spec=pltpu.PrefetchScalarGridSpec(
            num_scalar_prefetch=0,
            grid=grid,
            in_specs=[
                # activations straight from (B, W, P, E)
                pl.BlockSpec((1, W, Tp, E), lambda b, p, n: (b, 0, p, 0)),
                # weight: constant block index over b/p -> fetched once, resident
                pl.BlockSpec((W, E, Tn),    lambda b, p, n: (0, 0, n)),
                # bias (lane-repeated per channel), resident
                pl.BlockSpec((1, Tn),       lambda b, p, n: (0, n)),
            ],
            out_specs=pl.BlockSpec((1, Tp, Tn), lambda b, p, n: (b, p, n)),
        ),
        out_shape=jax.ShapeDtypeStruct((B, P, N), out_dtype),
        compiler_params=pltpu.CompilerParams(
            dimension_semantics=("parallel", "parallel", "parallel"),
        ),
        cost_estimate=cost,
    )(x, w2, b2)

    # ---- depatchify (pure layout, left to XLA): (B, P, N) -> (B, 1, C, img, img) ----
    y = out_flat.reshape(B, hp, hp, C, ps, ps)
    y = jnp.transpose(y, (0, 3, 1, 4, 2, 5)).reshape(B, C, img_size, img_size)
    return y.reshape(B, 1, C, img_size, img_size)


# ----------------------------- pure-JAX reference -----------------------------

def ref_decoder(x, weight, bias, *, img_size, patch_size, window_size, in_chans, embed_dim):
    hp = img_size // patch_size
    P = hp * hp
    W, E, C, ps = window_size, embed_dim, in_chans, patch_size
    B = x.size // (W * P * E)
    x = x.reshape(B, W, P, E)
    x = jnp.swapaxes(x, 2, 3)                                  # transpose(2,3)
    x = x.reshape(B, W * E, hp, hp)                            # flatten(1,2) + view
    wt = weight.reshape(W * E, C, ps, ps)
    # ConvTranspose2d with stride == kernel_size, padding 0 (non-overlapping patches):
    y = jnp.einsum('bkij,kcuv->bciujv', x, wt, precision=jax.lax.Precision.HIGHEST)
    y = y.reshape(B, C, img_size, img_size)
    y = y + bias.reshape(1, C, 1, 1)
    return y.reshape(B, 1, C, img_size, img_size)


# ----------------------------------- main --------------------------------------

if __name__ == "__main__":
    # small shapes consistent with the module (defaults scaled down)
    IMG, PS, WIN, CIN, EMB = 32, 8, 2, 2, 32
    NP = (IMG // PS) ** 2      # 16 patches
    B = 2

    root = jax.random.PRNGKey(0)
    kx, kw, kb = jax.random.split(root, 3)
    x = jax.random.normal(kx, (B, WIN, NP, EMB), jnp.float32)
    weight = (0.05 * jax.random.normal(kw, (WIN * EMB, CIN, PS, PS))).astype(jnp.float32)
    bias = (0.05 * jax.random.normal(kb, (CIN,))).astype(jnp.float32)

    cfg = dict(img_size=IMG, patch_size=PS, window_size=WIN, in_chans=CIN, embed_dim=EMB)

    ref = jax.block_until_ready(ref_decoder(x, weight, bias, **cfg))

    # f32 path (exact)
    out = jax.block_until_ready(decoder_forward(x, weight, bias, **cfg))
    assert out.shape == (B, 1, CIN, IMG, IMG)
    np.testing.assert_allclose(np.asarray(out), np.asarray(ref), atol=2e-4, rtol=2e-4)

    # bf16 path: inputs already bf16 in HBM (no wrapper-side cast), f32 accumulation
    out_bf16 = jax.block_until_ready(
        decoder_forward(x.astype(jnp.bfloat16), weight.astype(jnp.bfloat16), bias, **cfg))
    np.testing.assert_allclose(np.asarray(out_bf16, dtype=np.float32), np.asarray(ref),
                               atol=5e-2, rtol=5e-2)

    print("KERNEL_OK")
</pallas_src>

<mosaic_0001>
module attributes {stable_mosaic.version = 11 : i64} {
  func.func @kernel(%arg0: i32, %arg1: i32, %arg2: i32, %arg3: memref<1x2x16x32xf32, #tpu.memory_space<vmem>>, %arg4: memref<2x32x128xf32, #tpu.memory_space<vmem>>, %arg5: memref<1x128xf32, #tpu.memory_space<vmem>>, %arg6: memref<1x16x128xf32, #tpu.memory_space<vmem>>) attributes {dimension_semantics = [#tpu.dimension_semantics<parallel>, #tpu.dimension_semantics<parallel>, #tpu.dimension_semantics<parallel>], iteration_bounds = array<i64: 2, 1, 1>, scalar_prefetch = 0 : i64, scratch_operands = 0 : i64, tpu.core_type = #tpu.core_type<tc>, window_params = [{transform_indices = @transform_0, window_bounds = array<i64: 1, 2, 16, 32>}, {transform_indices = @transform_1, window_bounds = array<i64: 2, 32, 128>}, {transform_indices = @transform_2, window_bounds = array<i64: 1, 128>}, {transform_indices = @transform_3, window_bounds = array<i64: 1, 16, 128>}]} {
    %c0 = arith.constant 0 : index
    %c0_0 = arith.constant 0 : index
    %c0_1 = arith.constant 0 : index
    %c0_2 = arith.constant 0 : index
    %0 = vector.load %arg3[%c0, %c0_0, %c0_1, %c0_2] : memref<1x2x16x32xf32, #tpu.memory_space<vmem>>, vector<1x1x16x32xf32>
    %1 = vector.shape_cast %0 : vector<1x1x16x32xf32> to vector<16x32xf32>
    %c0_3 = arith.constant 0 : index
    %c0_4 = arith.constant 0 : index
    %c0_5 = arith.constant 0 : index
    %2 = vector.load %arg4[%c0_3, %c0_4, %c0_5] : memref<2x32x128xf32, #tpu.memory_space<vmem>>, vector<1x32x128xf32>
    %3 = vector.shape_cast %2 : vector<1x32x128xf32> to vector<32x128xf32>
    %cst = arith.constant dense<0.000000e+00> : vector<16x128xf32>
    %4 = tpu.matmul %1, %3, %cst {dimension_numbers = #tpu.dot_dimension_numbers<[1], [0], [0], [1], [0, 0, 1, 1], [], []>} : vector<16x32xf32>, vector<32x128xf32>, vector<16x128xf32> -> vector<16x128xf32>
    %c0_6 = arith.constant 0 : index
    %c1 = arith.constant 1 : index
    %c0_7 = arith.constant 0 : index
    %c0_8 = arith.constant 0 : index
    %5 = vector.load %arg3[%c0_6, %c1, %c0_7, %c0_8] : memref<1x2x16x32xf32, #tpu.memory_space<vmem>>, vector<1x1x16x32xf32>
    %6 = vector.shape_cast %5 : vector<1x1x16x32xf32> to vector<16x32xf32>
    %c1_9 = arith.constant 1 : index
    %c0_10 = arith.constant 0 : index
    %c0_11 = arith.constant 0 : index
    %7 = vector.load %arg4[%c1_9, %c0_10, %c0_11] : memref<2x32x128xf32, #tpu.memory_space<vmem>>, vector<1x32x128xf32>
    %8 = vector.shape_cast %7 : vector<1x32x128xf32> to vector<32x128xf32>
    %cst_12 = arith.constant dense<0.000000e+00> : vector<16x128xf32>
    %9 = tpu.matmul %6, %8, %cst_12 {dimension_numbers = #tpu.dot_dimension_numbers<[1], [0], [0], [1], [0, 0, 1, 1], [], []>} : vector<16x32xf32>, vector<32x128xf32>, vector<16x128xf32> -> vector<16x128xf32>
    %10 = arith.addf %4, %9 : vector<16x128xf32>
    %c0_13 = arith.constant 0 : index
    %c0_14 = arith.constant 0 : index
    %11 = vector.load %arg5[%c0_13, %c0_14] : memref<1x128xf32, #tpu.memory_space<vmem>>, vector<1x128xf32>
    %12 = vector.broadcast %11 : vector<1x128xf32> to vector<16x128xf32>
    %13 = arith.addf %10, %12 : vector<16x128xf32>
    %c0_15 = arith.constant 0 : index
    %c0_16 = arith.constant 0 : index
    %c0_17 = arith.constant 0 : index
    %14 = vector.load %arg6[%c0_15, %c0_16, %c0_17] : memref<1x16x128xf32, #tpu.memory_space<vmem>>, vector<1x16x128xf32>
    %15 = vector.shape_cast %14 : vector<1x16x128xf32> to vector<16x128xf32>
    %16 = vector.shape_cast %13 : vector<16x128xf32> to vector<1x16x128xf32>
    tpu.vector_store %arg6[%c0_15, %c0_16, %c0_17], %16 {strides = array<i32>} : memref<1x16x128xf32, #tpu.memory_space<vmem>>, vector<1x16x128xf32>,
    return
  }
  func.func @transform_0(%arg0: i32, %arg1: i32, %arg2: i32) -> (i32, i32, i32, i32) {
    %c0_i32 = arith.constant 0 : i32
    %c0_i32_0 = arith.constant 0 : i32
    %c0_i32_1 = arith.constant 0 : i32
    return %arg0, %c0_i32, %arg1, %c0_i32_0 : i32, i32, i32, i32
  }
  func.func @transform_1(%arg0: i32, %arg1: i32, %arg2: i32) -> (i32, i32, i32) {
    %c0_i32 = arith.constant 0 : i32
    %c0_i32_0 = arith.constant 0 : i32
    %c0_i32_1 = arith.constant 0 : i32
    return %c0_i32, %c0_i32_0, %arg2 : i32, i32, i32
  }
  func.func @transform_2(%arg0: i32, %arg1: i32, %arg2: i32) -> (i32, i32) {
    %c0_i32 = arith.constant 0 : i32
    %c0_i32_0 = arith.constant 0 : i32
    return %c0_i32, %arg2 : i32, i32
  }
  func.func @transform_3(%arg0: i32, %arg1: i32, %arg2: i32) -> (i32, i32, i32) {
    %c0_i32 = arith.constant 0 : i32
    return %arg0, %arg1, %arg2 : i32, i32, i32
  }
}

</mosaic_0001>

<bundles_post_ra>
// kernel: tpu_custom_call.1
= control target key start
LH: loop header
LB: loop body
LE: loop exit
PB: predicated region body
PF: predicated region fallthrough
CT: control target
= control target key end

     0   :  { %8 = vsyncpa [#allocation3], 0  ;;  %s1142_s0 = inlined_call_operand.hbm [shape: f32[2,2,16,32], index: 0, kind: input, shape index: {}]   ;;  %s1143_s1 = inlined_call_operand.hbm [shape: f32[2,32,128], index: 1, kind: input, shape index: {}]   ;;  %s1144_s2 = inlined_call_operand.vmem [shape: f32[1,128], index: 2, kind: input, shape index: {}]   ;;  %s1145_s3 = inlined_call_operand.hbm [shape: f32[2,16,128], index: 3, kind: output, shape index: {}]  }
   0x1   :  { %10 = vsyncpa [#allocation3 + $0x1], 0 }
   0x2   :  { %11 = vsyncpa [#allocation6], 0 }
   0x3   :  { %12 = vsyncpa [#allocation4], 0 }
   0x4   :  { %14 = vsyncpa [#allocation4 + $0x1], 0  ;;  %s903_s12 = smov 0   ;;  %s905_s13 = smov 0  }
   0x5   :  { %s907_s14 = smov 0   ;;  %s909_s15 = smov 0  }
   0x6   :  { %s911_s16 = smov 0   ;;  %s913_s17 = smov 0  }
   0x7 LB: > { %s574_s18 = sadd.s32 4294967295, %s874_s17   ;;  %s575_s19 = sadd.s32 4294967294, %s874_s17   ;;  %s874_s17 = sphi %s913_s17, %s20_s17   ;;  %s870_s16 = sphi %s911_s16, %s1169_s16   ;;  %s866_s15 = sphi %s909_s15, %s1168_s15   ;;  %s862_s14 = sphi %s907_s14, %s1167_s14   ;;  %s858_s13 = sphi %s905_s13, %s1166_s13   ;;  %s854_s12 = sphi %s903_s12, %s1165_s12  }
   0x8   : > { %p61_p0 = scmp.ne.s32.totalorder %s858_s13, %s854_s12  ;;  %p937_p1 = scmp.eq.s32.totalorder %s574_s18, 0 }
   0x9   : > { %p941_p2 = scmp.eq.s32.totalorder %s574_s18, 1  ;;  %p147_p3 = scmp.eq.s32.totalorder %s575_s19, 1 }
   0xa   : > { %s1150_s20 = scalar_select %p937_p1, 1, 0 }
   0xb   : > { %s1151_s21 = scalar_select %p941_p2, 1, 0 }
   0xc   : > { %p947_p4 = por %p937_p1, %p61_p0  ;;  %p576_p5 = scmp.ge.s32.totalorder %s874_s17, 1 }
   0xd   : > { %p952_p6 = por %p147_p3, %p61_p0  ;;  %p154_p7 = scmp.lt.s32.totalorder %s874_s17, 3 }
   0xe   : > { %s1152_s22 = scalar_select %p947_p4, 1, 0 }
   0xf   : > { %s1153_s23 = scalar_select %p952_p6, 1, 0 }
  0x10   : > { %p957_p8 = pnand %p576_p5, %p154_p7  ;;  %s876_s25 = smov [#allocation5]  }
  0x11   : > { %s168_s26 = sshll.u32 %s876_s25, 4  ;;  %s39_s28 = sadd.s32 1, %s870_s16  ;;  %s169_s26 = int_to_ptr.vmem [resolvable:$true] %s168_s26 }
  0x12   : > { %s1154_s24 = scalar_select %p957_p8, 1, 0 }
  0x13   : > { %p661_p9 = pneg %p957_p8  ;;  %s730_s4 = scalar_lea.hbm %s1143_s1, 1024 }
  0x14   : > { %p731_p12 = scmp.ne.s32.totalorder %s1143_s1, %s730_s4  ;;  %p737_p5 = scmp.lt.u32.totalorder %s730_s4, %s1143_s1 }
  0x15   : > { %p966_p11 = pnand %p661_p9, %p937_p1 }
  0x17   : > { %p732_p13 = pneg %p966_p11 }
  0x19   : > { %p733_p0 = pnand %p732_p13, %p731_p12 }
  0x1b   : > { %p734_p3 = pneg %p733_p0 }
  0x1d   : > { %p739_p7 = pnand %p737_p5, %p734_p3 }
  0x1f   : > { %742 = shalt.err (!%p739_p7)
}
  0x20   : > { %s743_s9 = scalar_lea.vmem %s169_s26, 1024  ;;  %p751_p1 = scmp.lt.s32.totalorder %s169_s26, %s169_s26 }
  0x21   : > { %p744_p9 = scmp.ne.s32.totalorder %s169_s26, %s743_s9  ;;  %p752_p4 = scmp.lt.s32.totalorder %s743_s9, %s743_s9 }
  0x23   : > { %p746_p10 = pnand %p744_p9, %p732_p13  ;;  %p753_p8 = por %p752_p4, %p751_p1 }
  0x25   : > { %p747_p6 = pneg %p746_p10 }
  0x27   : > { %p754_p2 = pnand %p753_p8, %p747_p6 }
  0x29   : > { %757 = shalt.err (!%p754_p2)
}
  0x2a   : > { %s877_s10 = smov 128   ;;  %s878_s11 = smov 8  }
  0x2b   : > { %664 = dma.hbm_to_vmem [thread:$0]  (!%p966_p11), %s1143_s1, 1024, %s169_s26, [#allocation6], %s877_s10, %s877_s10, %s878_s11  }
  0x2c   : > { %p41_p1 = scmp.ge.s32.totalorder %s39_s28, 2  ;;  %s48_s25 = sadd.s32 1, %s862_s14 }
  0x2d   : > { %p55_p2 = scmp.ne.s32.totalorder %s862_s14, %s858_s13  ;;  %p56_p4 = scmp.eq.s32.totalorder %s874_s17, 0 }
  0x2e   : > { %s1171_s28 = smov (%p41_p1, %s39_s28), 0  ;;  %p1157_p8 = scmp.ne.s32.totalorder %s1151_s21, 0 }
  0x2f   : > { %p996_p6 = por %p56_p4, %p55_p2  ;;  %s43_s30 = ssub.s32 %s870_s16, %s1171_s28 }
  0x30   : > { %p1002_p10 = por %p1157_p8, %p55_p2  ;;  %p674_p12 = scmp.lt.s32.totalorder %s874_s17, 2 }
  0x31   : > { %p46_p11 = scmp.eq.s32.totalorder %s43_s30, 0  ;;  %s188_s26 = sand.u32 1, %s862_s14  }
  0x32   : > { %s580_s4 = sshll.u32 %s188_s26, 5  ;;  %s599_s6 = sshll.u32 %s870_s16, 9 }
  0x33   : > { %s1011_s5 = scalar_select %p46_p11, %s862_s14, %s48_s25  }
  0x34   : > { %s1017_s9 = scalar_lea.hbm %s1142_s0, %s599_s6  ;;  %s192_s21 = scalar_lea.vmem [#allocation2], %s580_s4 }
  0x35   : > { %s201_s18 = sshll.u32 %s192_s21, 4  ;;  %p1023_p13 = pnand %p674_p12, %p996_p6  ;;  %s1019_s18 = int_to_ptr.vmem [resolvable:$true] %s201_s18 }
  0x36   : > { %s1027_s25 = scalar_lea.sflag [#allocation3], %s188_s26  ;;  %s758_s30 = scalar_lea.hbm %s1017_s9, 512 }
  0x37   : > { %p759_p0 = scmp.ne.s32.totalorder %s1017_s9, %s758_s30  ;;  %p760_p3 = pneg %p1023_p13 }
  0x38   : > { %s763_s29 = scalar_lea.hbm %s1142_s0, 1024  ;;  %p764_p9 = scmp.lt.u32.totalorder %s1017_s9, %s1142_s0 }
  0x39   : > { %p761_p5 = pnand %p760_p3, %p759_p0  ;;  %p765_p1 = scmp.lt.u32.totalorder %s763_s29, %s758_s30 }
  0x3a   : > { %p767_p4 = scmp.lt.u32.totalorder %s758_s30, %s1017_s9 }
  0x3b   : > { %p762_p7 = pneg %p761_p5  ;;  %p766_p2 = por %p765_p1, %p764_p9 }
  0x3d   : > { %p768_p6 = por %p767_p4, %p766_p2 }
  0x3f   : > { %p769_p8 = pnand %p768_p6, %p762_p7 }
  0x41   : > { %772 = shalt.err (!%p769_p8)
}
  0x42   : > { %s773_s26 = scalar_lea.vmem %s1019_s18, 512  ;;  %s879_s21 = smov [#allocation2]  }
  0x43   : > { %p774_p12 = scmp.ne.s32.totalorder %s1019_s18, %s773_s26  ;;  %s778_s4 = sshll.u32 %s879_s21, 4  ;;  %s779_s4 = int_to_ptr.vmem [resolvable:$false] %s778_s4 }
  0x44   : > { %s780_s6 = scalar_lea.vmem %s779_s4, 1024  ;;  %p781_p5 = scmp.lt.s32.totalorder %s1019_s18, %s779_s4 }
  0x45   : > { %p776_p11 = pnand %p774_p12, %p760_p3  ;;  %p782_p9 = scmp.lt.s32.totalorder %s780_s6, %s773_s26 }
  0x47   : > { %p777_p0 = pneg %p776_p11  ;;  %p783_p1 = por %p782_p9, %p781_p5 }
  0x49   : > { %p784_p2 = pnand %p783_p1, %p777_p0 }
  0x4b   : > { %787 = shalt.err (!%p784_p2)
}
  0x4c   : > { %668 = dma.hbm_to_vmem [thread:$0]  (!%p1023_p13), %s1017_s9, 512, %s1019_s18, %s1027_s25, %s877_s10, %s877_s10, %s878_s11  }
  0x4d   : > { %p1160_p3 = scmp.ne.s32.totalorder %s1154_s24, 0 }
  0x4e   : > { %s1061_s30 = sand.u32 (!%p1160_p3), 1, %s858_s13   ;;  %p1161_p7 = scmp.ne.s32.totalorder (!%p1160_p3), %s1152_s22, 0 }
  0x4f   : > { %213 = sbr.rel (%p1160_p3) target bundleno = 334 (0x14e), region = 32  ;;  %s584_s29 = sshll.u32 (!%p1160_p3), %s1061_s30, 5 }
  0x50   : > { %s216_s7 = scalar_lea.sflag (!%p1160_p3), [#allocation3], %s1061_s30  ;;  %s1065_s8 = scalar_lea.vmem (!%p1160_p3), [#allocation2], %s584_s29 }
  0x56   : > { %841 = dma.done.wait (%p1161_p7), %s216_s7, 512  }
  0x57   : > { %843 = vsyncadd (%p1161_p7), %s216_s7, 4294966784  ;;  %p1162_p13 = scmp.ne.s32.totalorder %s1150_s20, 0 }
  0x59   : > { %845 = dma.done.wait (%p1162_p13), [#allocation6], 1024  }
  0x5a   : > { %847 = vsyncadd (%p1162_p13), [#allocation6], 4294966272  ;;  %v264_v0 = vld [vmem:[#allocation5 + $0x20] sm:$0xff]  ;;  %v265_v1 = vld [vmem:[#allocation5 + $0x28] sm:$0xff]  ;;  %vm268_vm0 = vcmask 261120   ;;  %s586_s20 = sshll.u32 %s1061_s30, 4 }
  0x5b   : > { %v256_v2 = vld [vmem:[#allocation5] sm:$0xff]  ;;  %v635_v3 = vpack.c.bf16 %v265_v1, %v264_v0  ;;  %v257_v4 = vld [vmem:[#allocation5 + $0x8] sm:$0xff]  ;;  %v266_v5 = vld [vmem:[#allocation5 + $0x30] sm:$0xff]  ;;  %s248_s22 = scalar_lea.vmem [#allocation7], %s586_s20  ;;  %s600_s9 = sshll.u32 %s866_s15, 8 }
  0x5c   : > { %v267_v6 = vld [vmem:[#allocation5 + $0x38] sm:$0xff]  ;;  %v643_v7 = vpack.c.bf16 %v257_v4, %v256_v2  ;;  %v258_v9 = vld [vmem:[#allocation5 + $0x10] sm:$0xff]  ;;  %v254_v13 = vld [vmem:[%s1065_s8] sm:$0xff]  ;;  %s459_s24 = sshll.u32 %s248_s22, 4  ;;  %s1093_s25 = scalar_lea.hbm %s1145_s3, %s600_s9  ;;  %s1088_s24 = int_to_ptr.vmem [resolvable:$true] %s459_s24 }
  0x5d   : > { %v639_v8 = vpack.c.bf16 %v267_v6, %v266_v5  ;;  %v259_v10 = vld [vmem:[#allocation5 + $0x18] sm:$0xff]  ;;  %v587_v11 = vld [vmem:[%s1065_s8 + $0x10] sm:$0xff]  ;;  %636 = vmatprep.subr.bf16.mxu1 %v635_v3  ;;  %632 = vmatprep.mubr.msk.f32.mxu0 %vm268_vm0, %v254_v13  ;;  %v255_v15 = vld [vmem:[%s1065_s8 + $0x8] sm:$0xff]  ;;  %s443_s26 = scalar_lea.sflag [#allocation4], %s1061_s30  ;;  %s788_s21 = scalar_lea.vmem %s1088_s24, 256 }
  0x5e   : > { %v647_v12 = vpack.c.bf16 %v259_v10, %v258_v9  ;;  %621 = vmatprep.mubr.msk.f32.mxu1 %vm268_vm0, %v587_v11  ;;  %644 = vmatprep.subr.bf16.mxu0 %v643_v7  ;;  %v588_v14 = vld [vmem:[%s1065_s8 + $0x18] sm:$0xff]  ;;  %v593_v18 = vld [vmem:[%s1144_s2] ss:$0 sm:$0xff]  ;;  %p789_p4 = scmp.ne.s32.totalorder %s1088_s24, %s788_s21  ;;  %s880_s15 = smov [#allocation7]  }
  0x5f   : > { %638 = vmatpush3.bf16.msra.mxu1 %v635_v3  ;;  %646 = vmatpush3.bf16.msra.mxu0 %v643_v7  ;;  %s792_s4 = sshll.u32 %s880_s15, 4  ;;  %s793_s4 = int_to_ptr.vmem [resolvable:$false] %s792_s4 }
  0x60   : > { %640 = vmatprep.subr.bf16.mxu1 %v639_v8  ;;  %648 = vmatprep.subr.bf16.mxu0 %v647_v12  ;;  %p790_p6 = pnand %p789_p4, %p1002_p10  ;;  %s794_s6 = scalar_lea.vmem %s793_s4, 512 }
  0x61   : > { %p795_p12 = scmp.lt.s32.totalorder %s1088_s24, %s793_s4  ;;  %p796_p11 = scmp.lt.s32.totalorder %s794_s6, %s788_s21 }
  0x62   : > { %p791_p8 = pneg %p790_p6 }
  0x63   : > { %642 = vmatpush3.bf16.msra.mxu1 %v639_v8  ;;  %650 = vmatpush3.bf16.msra.mxu0 %v647_v12  ;;  %p797_p0 = por %p796_p11, %p795_p12 }
  0x65   : > { %p798_p5 = pnand %p797_p0, %p791_p8 }
  0x66   : > { %622 = vmatmul.mubr.msk.f32.vlgmr.msra.gmra.mrb[0].mxu1 %vm268_vm0, %v588_v14  ;;  %633 = vmatmul.mubr.msk.f32.vlgmr.msra.gmra.mrb[0].mxu0 %vm268_vm0, %v255_v15 }
 0x139   : > { %v623_v16 = vpop.f32.mrb[0].mxu1  ;;  %v634_v17 = vpop.f32.mrb[0].mxu0 }
 0x13a   : > { %v341_v19 = vpop.f32.mrb[1].mxu1  ;;  %v428_v20 = vadd.f32 %v634_v17, %v623_v16  ;;  %v422_v21 = vpop.f32.mrb[1].mxu0 }
 0x13b   : > { %v423_v22 = vadd.f32 %v422_v21, %v341_v19 }
 0x13c   : > { %v439_v23 = vadd.f32 %v593_v18, %v428_v20 }
 0x13d   : > { %v438_v24 = vadd.f32 %v593_v18, %v423_v22 }
 0x13e   : > { %441 = vst [vmem:[%s248_s22 + $0x8] sm:$0xff] %v439_v23 }
 0x13f   : > { %440 = vst [vmem:[%s248_s22] sm:$0xff] %v438_v24 }
 0x140   : > { %801 = shalt.err (!%p798_p5)
}
 0x141   : > { %s802_s29 = scalar_lea.hbm %s1093_s25, 256  ;;  %s806_s20 = scalar_lea.hbm %s1145_s3, 512 }
 0x142   : > { %p803_p9 = scmp.ne.s32.totalorder %s1093_s25, %s802_s29  ;;  %p807_p3 = scmp.lt.u32.totalorder %s1093_s25, %s1145_s3 }
 0x143   : > { %p808_p7 = scmp.lt.u32.totalorder %s806_s20, %s802_s29  ;;  %p810_p4 = scmp.lt.u32.totalorder %s802_s29, %s1093_s25 }
 0x144   : > { %p804_p1 = pnand %p803_p9, %p1002_p10 }
 0x145   : > { %p809_p13 = por %p808_p7, %p807_p3 }
 0x146   : > { %p805_p2 = pneg %p804_p1 }
 0x147   : > { %p811_p6 = por %p810_p4, %p809_p13 }
 0x149   : > { %p812_p8 = pnand %p811_p6, %p805_p2 }
 0x14b   : > { %815 = shalt.err (!%p812_p8)
}
 0x14c   : > { %s881_s11 = smov 128   ;;  %s882_s9 = smov 8  }
 0x14d   : > { %659 = dma.vmem_to_hbm [thread:$0]  (%p1002_p10), %s1088_s24, 256, %s1093_s25, %s443_s26, %s881_s11, %s881_s11, %s882_s9  }
 0x14e PF: > { %s474_s18 = sand.u32 1, %s854_s12   ;;  %p1163_p12 = scmp.ne.s32.totalorder %s1153_s23, 0 }
 0x14f   : > { %p1164_p11 = scmp.ge.s32.totalorder %s874_s17, 2  ;;  %s475_s19 = scalar_lea.sflag [#allocation4], %s474_s18 }
 0x151   : > { %p670_p0 = pnand %p1164_p11, %p1163_p12 }
 0x153   : > { %849 = dma.done.wait (!%p670_p0), %s475_s19, 256  }
 0x154   : > { %851 = vsyncadd (!%p670_p0), %s475_s19, 4294967040  ;;  %s20_s17 = sadd.s32 1, %s874_s17   ;;  %s1165_s12 = smov %s858_s13 }
 0x155   : > { %p17_p5 = scmp.ge.s32.totalorder %s20_s17, 4   ;;  %s1166_s13 = smov %s862_s14 }
 0x156   : > { %s1167_s14 = smov %s1011_s5  ;;  %s1168_s15 = smov %s870_s16 }
 0x157   : > { %s1169_s16 = smov %s1171_s28  ;;  %19 = sbr.rel (!%p17_p5) target bundleno = 7 (0x7), region = 87 }
 0x15e   :  { %480 = vsyncpa [#allocation3], 1 }
 0x15f   :  { %482 = vsyncpa [#allocation3 + $0x1], 1 }
 0x160   :  { %483 = vsyncpa [#allocation6], 1 }
 0x161   :  { %484 = vsyncpa [#allocation4], 1 }
 0x162   :  { %486 = vsyncpa [#allocation4 + $0x1], 1 }

</bundles_post_ra>
